<compile_context>
chip_gen: v6e
topology: v6e:2x2x1
jax: 0.10.0
libtpu: 0.0.40
codegen_flags: <defaults>
</compile_context>

<pallas_src>
import functools

import jax
import jax.numpy as jnp
from jax.experimental import pallas as pl
from jax.experimental.pallas import tpu as pltpu


def _round_up(v, m):
    return ((v + m - 1) // m) * m


def _xqkv_g1_kernel(xT_ref, w_ref, b_ref, o_ref, *, num_heads, head_dim,
                    use_softmax):
    """One token tile.

    xT_ref: (E, t)   token-major input tile (input dtype -> MXU operand)
    w_ref : (4E, E)  fused [q|k|v|g] weight, PyTorch (out, in) layout
    b_ref : (4E, 1)  fused bias (f32)
    o_ref : (t, E)   output tile
    """
    H, D = num_heads, head_dim
    E = H * D

    x_t = xT_ref[...]                                   # (E, t)
    w = w_ref[...]                                       # (4E, E)
    t = x_t.shape[1]

    # Fused projection, already token-major: (4E, t), f32 accumulation.
    qkvg_t = jnp.dot(w, x_t, preferred_element_type=jnp.float32) + b_ref[...]

    q_t = qkvg_t[0 * E:1 * E, :]                          # (E, t)
    k_t = qkvg_t[1 * E:2 * E, :]
    v_t = qkvg_t[2 * E:3 * E, :]
    g_t = qkvg_t[3 * E:4 * E, :]
    qg_t = q_t * g_t                                      # (E, t)

    # Split the sublane axis into (head, head_dim).  D is a multiple of 8, so
    # this is a tile-aligned reshape (no relayout copies).
    qg_r = qg_t.reshape(H, D, t)
    k_r = k_t.reshape(H, D, t)
    v_r = v_t.reshape(H, D, t)

    # Per query head: packed (H, t) scores -> sublane softmax -> (D, t) output.
    # (For large H this loop should be bounded via lax.fori_loop / head groups
    #  with k_r/v_r staged in VMEM scratch; H is small in this configuration.)
    out_rows = []
    for i in range(H):
        qg_i = qg_r[i]                                            # (D, t)
        scores = jnp.sum(qg_i[None, :, :] * k_r, axis=1)          # (H, t)
        if use_softmax:
            m = jnp.max(scores, axis=0, keepdims=True)            # (1, t)
            e = jnp.exp(scores - m)                               # (H, t)
            denom = jnp.sum(e, axis=0, keepdims=True)             # (1, t)
            p = e / denom                                         # exact normalize
        else:
            p = scores
        out_i = jnp.sum(p[:, None, :] * v_r, axis=0)              # (D, t)
        out_rows.append(out_i)

    out_t = jnp.concatenate(out_rows, axis=0)                     # (E, t)
    # Cast before the single output-side transpose, then one lane-dense store.
    o_ref[...] = out_t.astype(o_ref.dtype).T                      # (t, E)


def xqkv_attention_g1(x, params, num_heads, use_softmax=True, token_tile=256):
    """x: (B, N, E).  params = (Wq, bq, Wk, bk, Wv, bv, Wg, bg) with W in the
    PyTorch nn.Linear (out, in) layout and b of shape (E,)."""
    B, N, E = x.shape
    assert E % num_heads == 0
    D = E // num_heads
    assert D % 8 == 0, "head_dim must be a multiple of 8 (f32 sublane tile)"

    wq, bq, wk, bk, wv, bv, wg, bg = params

    # Fused weight (4E, E), (out, in) layout -> the kernel computes W @ x_t and
    # never transposes the projection result.  MXU operands take the input
    # dtype; bias / accumulation / attention math stay f32.
    w = jnp.concatenate([wq, wk, wv, wg], axis=0).astype(x.dtype)       # (4E, E)
    b = jnp.concatenate(
        [jnp.reshape(bq, (E,)), jnp.reshape(bk, (E,)),
         jnp.reshape(bv, (E,)), jnp.reshape(bg, (E,))], axis=0,
    ).reshape(4 * E, 1).astype(jnp.float32)                             # (4E, 1)

    T = B * N
    # Token tile: multiple of 128 (lane width of the token-major layout); shrink
    # for small inputs so we don't pad to a needlessly large tile.  On v7x keep
    # n_tiles >= 2 where possible so the "parallel" axis spans both TensorCores.
    token_tile = max(128, (token_tile // 128) * 128)
    tile = min(token_tile, _round_up(max(T, 1), 128))
    n_tiles = pl.cdiv(T, tile)
    Tp = n_tiles * tile

    xt = x.reshape(T, E)
    if Tp != T:
        xt = jnp.pad(xt, ((0, Tp - T), (0, 0)))
    x_tm = xt.T                               # (E, Tp) one-time wrapper relayout

    kernel = functools.partial(_xqkv_g1_kernel, num_heads=num_heads,
                               head_dim=D, use_softmax=use_softmax)

    # Constant-index weight/bias blocks are single-buffered (no pointless
    # double-buffering of blocks that never change).
    x_spec = pl.BlockSpec((E, tile), lambda i: (0, i))
    w_spec = pl.BlockSpec((4 * E, E), lambda i: (0, 0),
                          pipeline_mode=pl.Buffered(1))
    b_spec = pl.BlockSpec((4 * E, 1), lambda i: (0, 0),
                          pipeline_mode=pl.Buffered(1))
    o_spec = pl.BlockSpec((tile, E), lambda i: (i, 0))

    # Right-sized VMEM budget: single-buffered weights + double-buffered token
    # I/O + generous f32 working-set headroom, capped at v7x's 64 MiB/TC.
    itemsize = x.dtype.itemsize
    vmem_need = (4 * E * E * itemsize                  # fused weight (1 buffer)
                 + 4 * E * 128 * 4                     # bias (lane-padded)
                 + 2 * 2 * E * tile * itemsize         # in + out blocks, 2 buffers
                 + 10 * 4 * E * tile * 4)              # f32 qkvg + attention temps
    vmem_limit = int(min(max(2 * vmem_need, 32 << 20), 64 << 20))

    out = pl.pallas_call(
        kernel,
        out_shape=jax.ShapeDtypeStruct((Tp, E), x.dtype),
        grid_spec=pltpu.PrefetchScalarGridSpec(
            num_scalar_prefetch=0,
            grid=(n_tiles,),
            in_specs=[x_spec, w_spec, b_spec],
            out_specs=o_spec,
        ),
        compiler_params=pltpu.CompilerParams(
            dimension_semantics=("parallel",),
            vmem_limit_bytes=vmem_limit,
        ),
    )(x_tm, w, b)

    return out[:T].reshape(B, N, E)


def _reference(x, torch_params, num_heads, use_softmax=True):
    """Pure-JAX mirror of the PyTorch forward (weights in PyTorch (out,in) layout)."""
    (Wq, bq), (Wk, bk), (Wv, bv), (Wg, bg) = torch_params
    B, N, E = x.shape
    D = E // num_heads
    lin = lambda x, W, b: x @ W.T + b
    q = lin(x, Wq, bq).reshape(B, N, num_heads, D)
    k = lin(x, Wk, bk).reshape(B, N, num_heads, D)
    v = lin(x, Wv, bv).reshape(B, N, num_heads, D)
    g = lin(x, Wg, bg).reshape(B, N, num_heads, D)
    att = jnp.einsum('bnhd,bnjd->bnhj', q * g, k)
    if use_softmax:
        att = jax.nn.softmax(att, axis=-1)
    out = jnp.einsum('bnhj,bnjd->bnhd', att, v)
    return out.reshape(B, N, E)


if __name__ == "__main__":
    B, N, E, H = 2, 8, 32, 4  # batch, seq, embed_dim, num_heads

    key = jax.random.PRNGKey(0)
    keys = jax.random.split(key, 9)
    x = jax.random.normal(keys[0], (B, N, E), dtype=jnp.float32)

    # Deterministic params in PyTorch nn.Linear convention: W (out, in), b (out,)
    def make_linear(kw, kb):
        W = jax.random.normal(kw, (E, E), dtype=jnp.float32) * 0.1
        b = jax.random.normal(kb, (E,), dtype=jnp.float32) * 0.1
        return W, b

    torch_params = [make_linear(keys[1 + 2 * i], keys[2 + 2 * i]) for i in range(4)]
    kernel_params = tuple(p for W, b in torch_params for p in (W, b))

    ref = _reference(x, torch_params, num_heads=H, use_softmax=True)

    # f32 run.  Softmax normalization is exact now; the remaining tolerance
    # covers MXU default-precision f32 matmul differences vs the XLA reference.
    out = xqkv_attention_g1(x, kernel_params, num_heads=H, use_softmax=True)
    out = jax.block_until_ready(out)
    assert out.shape == (B, N, E)
    err = float(jnp.max(jnp.abs(out - ref)))
    assert err < 1e-2, f"f32 max abs err = {err}"

    # bf16-operand run (the MXU-throughput path); attention math stays f32.
    # Compare against a reference that sees the same bf16-rounded x / weights.
    x_bf16 = x.astype(jnp.bfloat16)
    torch_params_bf = [
        (W.astype(jnp.bfloat16).astype(jnp.float32), b) for W, b in torch_params
    ]
    ref_bf = _reference(x_bf16.astype(jnp.float32), torch_params_bf,
                        num_heads=H, use_softmax=True)
    out_bf = xqkv_attention_g1(x_bf16, kernel_params, num_heads=H, use_softmax=True)
    out_bf = jax.block_until_ready(out_bf)
    err_bf = float(jnp.max(jnp.abs(out_bf.astype(jnp.float32) - ref_bf)))
    assert err_bf < 5e-2, f"bf16 max abs err = {err_bf}"

    print("KERNEL_OK")
</pallas_src>

<mosaic_0001>
module attributes {stable_mosaic.version = 11 : i64} {
  func.func @_xqkv_g1_kernel(%arg0: i32, %arg1: memref<32x128xf32, #tpu.memory_space<vmem>>, %arg2: memref<128x32xf32, #tpu.memory_space<vmem>>, %arg3: memref<128x1xf32, #tpu.memory_space<vmem>>, %arg4: memref<128x32xf32, #tpu.memory_space<vmem>>) attributes {dimension_semantics = [#tpu.dimension_semantics<parallel>], iteration_bounds = array<i64: 1>, scalar_prefetch = 0 : i64, scratch_operands = 0 : i64, tpu.core_type = #tpu.core_type<tc>, window_params = [{transform_indices = @transform_0, window_bounds = array<i64: 32, 128>}, {pipeline_mode = #tpu.pipeline_mode<synchronous>, transform_indices = @transform_1, window_bounds = array<i64: 128, 32>}, {pipeline_mode = #tpu.pipeline_mode<synchronous>, transform_indices = @transform_2, window_bounds = array<i64: 128, 1>}, {transform_indices = @transform_3, window_bounds = array<i64: 128, 32>}]} {
    %c0 = arith.constant 0 : index
    %c0_0 = arith.constant 0 : index
    %0 = vector.load %arg1[%c0, %c0_0] : memref<32x128xf32, #tpu.memory_space<vmem>>, vector<32x128xf32>
    %c0_1 = arith.constant 0 : index
    %c0_2 = arith.constant 0 : index
    %1 = vector.load %arg2[%c0_1, %c0_2] : memref<128x32xf32, #tpu.memory_space<vmem>>, vector<128x32xf32>
    %cst = arith.constant dense<0.000000e+00> : vector<128x128xf32>
    %2 = tpu.matmul %1, %0, %cst {dimension_numbers = #tpu.dot_dimension_numbers<[1], [0], [0], [1], [0, 0, 1, 1], [], []>} : vector<128x32xf32>, vector<32x128xf32>, vector<128x128xf32> -> vector<128x128xf32>
    %c0_3 = arith.constant 0 : index
    %c0_4 = arith.constant 0 : index
    %3 = vector.load %arg3[%c0_3, %c0_4] : memref<128x1xf32, #tpu.memory_space<vmem>>, vector<128x1xf32>
    %4 = vector.broadcast %3 : vector<128x1xf32> to vector<128x128xf32>
    %5 = arith.addf %2, %4 : vector<128x128xf32>
    %6 = vector.extract_strided_slice %5 {offsets = [0, 0], sizes = [32, 128], strides = [1, 1]} : vector<128x128xf32> to vector<32x128xf32>
    %7 = vector.extract_strided_slice %5 {offsets = [32, 0], sizes = [32, 128], strides = [1, 1]} : vector<128x128xf32> to vector<32x128xf32>
    %8 = vector.extract_strided_slice %5 {offsets = [64, 0], sizes = [32, 128], strides = [1, 1]} : vector<128x128xf32> to vector<32x128xf32>
    %9 = vector.extract_strided_slice %5 {offsets = [96, 0], sizes = [32, 128], strides = [1, 1]} : vector<128x128xf32> to vector<32x128xf32>
    %10 = arith.mulf %6, %9 : vector<32x128xf32>
    %11 = vector.shape_cast %10 : vector<32x128xf32> to vector<4x8x128xf32>
    %12 = vector.shape_cast %7 : vector<32x128xf32> to vector<4x8x128xf32>
    %13 = vector.shape_cast %8 : vector<32x128xf32> to vector<4x8x128xf32>
    %14 = vector.extract_strided_slice %11 {offsets = [0, 0, 0], sizes = [1, 8, 128], strides = [1, 1, 1]} : vector<4x8x128xf32> to vector<1x8x128xf32>
    %15 = vector.shape_cast %14 : vector<1x8x128xf32> to vector<8x128xf32>
    %16 = vector.shape_cast %15 : vector<8x128xf32> to vector<1x8x128xf32>
    %17 = vector.broadcast %16 : vector<1x8x128xf32> to vector<4x8x128xf32>
    %18 = arith.mulf %17, %12 : vector<4x8x128xf32>
    %cst_5 = arith.constant dense<0.000000e+00> : vector<4x128xf32>
    %19 = vector.multi_reduction <add>, %18, %cst_5 [1] : vector<4x8x128xf32> to vector<4x128xf32>
    %cst_6 = arith.constant dense<0xFF800000> : vector<128xf32>
    %20 = vector.multi_reduction <maximumf>, %19, %cst_6 [0] : vector<4x128xf32> to vector<128xf32>
    %21 = vector.shape_cast %20 : vector<128xf32> to vector<1x128xf32>
    %22 = vector.broadcast %21 : vector<1x128xf32> to vector<4x128xf32>
    %23 = arith.subf %19, %22 : vector<4x128xf32>
    %24 = math.exp %23 : vector<4x128xf32>
    %cst_7 = arith.constant dense<0.000000e+00> : vector<128xf32>
    %25 = vector.multi_reduction <add>, %24, %cst_7 [0] : vector<4x128xf32> to vector<128xf32>
    %26 = vector.shape_cast %25 : vector<128xf32> to vector<1x128xf32>
    %27 = vector.broadcast %26 : vector<1x128xf32> to vector<4x128xf32>
    %28 = arith.divf %24, %27 : vector<4x128xf32>
    %29 = vector.shape_cast %28 : vector<4x128xf32> to vector<4x1x128xf32>
    %30 = vector.broadcast %29 : vector<4x1x128xf32> to vector<4x8x128xf32>
    %31 = arith.mulf %30, %13 : vector<4x8x128xf32>
    %cst_8 = arith.constant dense<0.000000e+00> : vector<8x128xf32>
    %32 = vector.multi_reduction <add>, %31, %cst_8 [0] : vector<4x8x128xf32> to vector<8x128xf32>
    %33 = vector.extract_strided_slice %11 {offsets = [1, 0, 0], sizes = [1, 8, 128], strides = [1, 1, 1]} : vector<4x8x128xf32> to vector<1x8x128xf32>
    %34 = vector.shape_cast %33 : vector<1x8x128xf32> to vector<8x128xf32>
    %35 = vector.shape_cast %34 : vector<8x128xf32> to vector<1x8x128xf32>
    %36 = vector.broadcast %35 : vector<1x8x128xf32> to vector<4x8x128xf32>
    %37 = arith.mulf %36, %12 : vector<4x8x128xf32>
    %cst_9 = arith.constant dense<0.000000e+00> : vector<4x128xf32>
    %38 = vector.multi_reduction <add>, %37, %cst_9 [1] : vector<4x8x128xf32> to vector<4x128xf32>
    %cst_10 = arith.constant dense<0xFF800000> : vector<128xf32>
    %39 = vector.multi_reduction <maximumf>, %38, %cst_10 [0] : vector<4x128xf32> to vector<128xf32>
    %40 = vector.shape_cast %39 : vector<128xf32> to vector<1x128xf32>
    %41 = vector.broadcast %40 : vector<1x128xf32> to vector<4x128xf32>
    %42 = arith.subf %38, %41 : vector<4x128xf32>
    %43 = math.exp %42 : vector<4x128xf32>
    %cst_11 = arith.constant dense<0.000000e+00> : vector<128xf32>
    %44 = vector.multi_reduction <add>, %43, %cst_11 [0] : vector<4x128xf32> to vector<128xf32>
    %45 = vector.shape_cast %44 : vector<128xf32> to vector<1x128xf32>
    %46 = vector.broadcast %45 : vector<1x128xf32> to vector<4x128xf32>
    %47 = arith.divf %43, %46 : vector<4x128xf32>
    %48 = vector.shape_cast %47 : vector<4x128xf32> to vector<4x1x128xf32>
    %49 = vector.broadcast %48 : vector<4x1x128xf32> to vector<4x8x128xf32>
    %50 = arith.mulf %49, %13 : vector<4x8x128xf32>
    %cst_12 = arith.constant dense<0.000000e+00> : vector<8x128xf32>
    %51 = vector.multi_reduction <add>, %50, %cst_12 [0] : vector<4x8x128xf32> to vector<8x128xf32>
    %52 = vector.extract_strided_slice %11 {offsets = [2, 0, 0], sizes = [1, 8, 128], strides = [1, 1, 1]} : vector<4x8x128xf32> to vector<1x8x128xf32>
    %53 = vector.shape_cast %52 : vector<1x8x128xf32> to vector<8x128xf32>
    %54 = vector.shape_cast %53 : vector<8x128xf32> to vector<1x8x128xf32>
    %55 = vector.broadcast %54 : vector<1x8x128xf32> to vector<4x8x128xf32>
    %56 = arith.mulf %55, %12 : vector<4x8x128xf32>
    %cst_13 = arith.constant dense<0.000000e+00> : vector<4x128xf32>
    %57 = vector.multi_reduction <add>, %56, %cst_13 [1] : vector<4x8x128xf32> to vector<4x128xf32>
    %cst_14 = arith.constant dense<0xFF800000> : vector<128xf32>
    %58 = vector.multi_reduction <maximumf>, %57, %cst_14 [0] : vector<4x128xf32> to vector<128xf32>
    %59 = vector.shape_cast %58 : vector<128xf32> to vector<1x128xf32>
    %60 = vector.broadcast %59 : vector<1x128xf32> to vector<4x128xf32>
    %61 = arith.subf %57, %60 : vector<4x128xf32>
    %62 = math.exp %61 : vector<4x128xf32>
    %cst_15 = arith.constant dense<0.000000e+00> : vector<128xf32>
    %63 = vector.multi_reduction <add>, %62, %cst_15 [0] : vector<4x128xf32> to vector<128xf32>
    %64 = vector.shape_cast %63 : vector<128xf32> to vector<1x128xf32>
    %65 = vector.broadcast %64 : vector<1x128xf32> to vector<4x128xf32>
    %66 = arith.divf %62, %65 : vector<4x128xf32>
    %67 = vector.shape_cast %66 : vector<4x128xf32> to vector<4x1x128xf32>
    %68 = vector.broadcast %67 : vector<4x1x128xf32> to vector<4x8x128xf32>
    %69 = arith.mulf %68, %13 : vector<4x8x128xf32>
    %cst_16 = arith.constant dense<0.000000e+00> : vector<8x128xf32>
    %70 = vector.multi_reduction <add>, %69, %cst_16 [0] : vector<4x8x128xf32> to vector<8x128xf32>
    %71 = vector.extract_strided_slice %11 {offsets = [3, 0, 0], sizes = [1, 8, 128], strides = [1, 1, 1]} : vector<4x8x128xf32> to vector<1x8x128xf32>
    %72 = vector.shape_cast %71 : vector<1x8x128xf32> to vector<8x128xf32>
    %73 = vector.shape_cast %72 : vector<8x128xf32> to vector<1x8x128xf32>
    %74 = vector.broadcast %73 : vector<1x8x128xf32> to vector<4x8x128xf32>
    %75 = arith.mulf %74, %12 : vector<4x8x128xf32>
    %cst_17 = arith.constant dense<0.000000e+00> : vector<4x128xf32>
    %76 = vector.multi_reduction <add>, %75, %cst_17 [1] : vector<4x8x128xf32> to vector<4x128xf32>
    %cst_18 = arith.constant dense<0xFF800000> : vector<128xf32>
    %77 = vector.multi_reduction <maximumf>, %76, %cst_18 [0] : vector<4x128xf32> to vector<128xf32>
    %78 = vector.shape_cast %77 : vector<128xf32> to vector<1x128xf32>
    %79 = vector.broadcast %78 : vector<1x128xf32> to vector<4x128xf32>
    %80 = arith.subf %76, %79 : vector<4x128xf32>
    %81 = math.exp %80 : vector<4x128xf32>
    %cst_19 = arith.constant dense<0.000000e+00> : vector<128xf32>
    %82 = vector.multi_reduction <add>, %81, %cst_19 [0] : vector<4x128xf32> to vector<128xf32>
    %83 = vector.shape_cast %82 : vector<128xf32> to vector<1x128xf32>
    %84 = vector.broadcast %83 : vector<1x128xf32> to vector<4x128xf32>
    %85 = arith.divf %81, %84 : vector<4x128xf32>
    %86 = vector.shape_cast %85 : vector<4x128xf32> to vector<4x1x128xf32>
    %87 = vector.broadcast %86 : vector<4x1x128xf32> to vector<4x8x128xf32>
    %88 = arith.mulf %87, %13 : vector<4x8x128xf32>
    %cst_20 = arith.constant dense<0.000000e+00> : vector<8x128xf32>
    %89 = vector.multi_reduction <add>, %88, %cst_20 [0] : vector<4x8x128xf32> to vector<8x128xf32>
    %90 = tpu.concatenate %32, %51, %70, %89 in 0 : vector<8x128xf32>, vector<8x128xf32>, vector<8x128xf32>, vector<8x128xf32> -> vector<32x128xf32>
    %91 = tpu.transpose %90, [1, 0] : vector<32x128xf32> -> vector<128x32xf32>
    %c0_21 = arith.constant 0 : index
    %c0_22 = arith.constant 0 : index
    %92 = vector.load %arg4[%c0_21, %c0_22] : memref<128x32xf32, #tpu.memory_space<vmem>>, vector<128x32xf32>
    tpu.vector_store %arg4[%c0_21, %c0_22], %91 {strides = array<i32>} : memref<128x32xf32, #tpu.memory_space<vmem>>, vector<128x32xf32>,
    return
  }
  func.func @transform_0(%arg0: i32) -> (i32, i32) {
    %c0_i32 = arith.constant 0 : i32
    %c0_i32_0 = arith.constant 0 : i32
    return %c0_i32, %arg0 : i32, i32
  }
  func.func @transform_1(%arg0: i32) -> (i32, i32) {
    %c0_i32 = arith.constant 0 : i32
    %c0_i32_0 = arith.constant 0 : i32
    %c0_i32_1 = arith.constant 0 : i32
    return %c0_i32, %c0_i32_0 : i32, i32
  }
  func.func @transform_2(%arg0: i32) -> (i32, i32) {
    %c0_i32 = arith.constant 0 : i32
    %c0_i32_0 = arith.constant 0 : i32
    %c0_i32_1 = arith.constant 0 : i32
    return %c0_i32, %c0_i32_0 : i32, i32
  }
  func.func @transform_3(%arg0: i32) -> (i32, i32) {
    %c0_i32 = arith.constant 0 : i32
    %c0_i32_0 = arith.constant 0 : i32
    return %arg0, %c0_i32 : i32, i32
  }
}

</mosaic_0001>

<bundles_post_ra>
// kernel: tpu_custom_call.1
= control target key start
LH: loop header
LB: loop body
LE: loop exit
PB: predicated region body
PF: predicated region fallthrough
CT: control target
= control target key end

     0   :  { %v876_v2 = vmov 0   ;;  %vm130_vm0 = vcmask 261120   ;;  %vm376_vm1 = vcmask 1041409   ;;  %vm379_vm2 = vcmask 1042434   ;;  %s1274_s0 = inlined_call_operand.vmem [shape: f32[32,128], index: 0, kind: input, shape index: {}]   ;;  %s1275_s1 = inlined_call_operand.vmem [shape: f32[128,32], index: 1, kind: input, shape index: {}]   ;;  %s1276_s2 = inlined_call_operand.vmem [shape: f32[128,1], index: 2, kind: input, shape index: {}]   ;;  %s1277_s3 = inlined_call_operand.vmem [shape: f32[128,32], index: 3, kind: output, shape index: {}]  }
   0x1   :  { %v17_v0 = vld [vmem:[%s1274_s0 + $0x18] sm:$0xff]  ;;  %v16_v1 = vld [vmem:[%s1274_s0 + $0x10] sm:$0xff]  ;;  %834 = vset.pattern.permute.xlu0 %v876_v2  ;;  %835 = vset.pattern.permute.xlu1 %v876_v2  ;;  %v15_v3 = vld [vmem:[%s1274_s0 + $0x8] sm:$0xff]  ;;  %vm382_vm3 = vcmask 1043459   ;;  %vm385_vm4 = vcmask 1043456  }
   0x2   :  { %792 = vmatprep.subr.mxu0 %v17_v0  ;;  %824 = vmatprep.subr.mxu1 %v17_v0  ;;  %v14_v4 = vld [vmem:[%s1274_s0] sm:$0xff]  ;;  %v19_v7 = vld [vmem:[%s1275_s1 + $0x8] sm:$0xff]  ;;  %v20_v9 = vld [vmem:[%s1275_s1 + $0x10] sm:$0xff] }
   0x3   :  { %793 = vmatpush3.msra.mxu0 %v17_v0  ;;  %828 = vmatpush3.msra.mxu1 %v17_v0  ;;  %v18_v5 = vld [vmem:[%s1275_s1] sm:$0xff]  ;;  %v27_v8 = vld [vmem:[%s1275_s1 + $0x48] sm:$0xff]  ;;  %v28_v10 = vld [vmem:[%s1275_s1 + $0x50] sm:$0xff] }
   0x4   :  { %794 = vmatprep.subr.mxu0 %v16_v1  ;;  %825 = vmatprep.subr.mxu1 %v16_v1  ;;  %v26_v6 = vld [vmem:[%s1275_s1 + $0x40] sm:$0xff]  ;;  %v35_v12 = vld [vmem:[%s1276_s2 + $0x8] sm:$0xff]  ;;  %v21_v13 = vld [vmem:[%s1275_s1 + $0x18] sm:$0xff] }
   0x5   :  { %795 = vmatpush3.msra.mxu0 %v16_v1  ;;  %829 = vmatpush3.msra.mxu1 %v16_v1  ;;  %v34_v11 = vld [vmem:[%s1276_s2] sm:$0xff]  ;;  %v29_v14 = vld [vmem:[%s1275_s1 + $0x58] sm:$0xff]  ;;  %v23_v19 = vld [vmem:[%s1275_s1 + $0x28] sm:$0xff] }
   0x6   :  { %796 = vmatprep.subr.mxu0 %v15_v3  ;;  %826 = vmatprep.subr.mxu1 %v15_v3  ;;  %v22_v15 = vld [vmem:[%s1275_s1 + $0x20] sm:$0xff]  ;;  %v31_v20 = vld [vmem:[%s1275_s1 + $0x68] sm:$0xff]  ;;  %v24_v21 = vld [vmem:[%s1275_s1 + $0x30] sm:$0xff] }
   0x7   :  { %797 = vmatpush3.msra.mxu0 %v15_v3  ;;  %830 = vmatpush3.msra.mxu1 %v15_v3  ;;  %v30_v16 = vld [vmem:[%s1275_s1 + $0x60] sm:$0xff]  ;;  %v32_v22 = vld [vmem:[%s1275_s1 + $0x70] sm:$0xff]  ;;  %v39_v23 = vld [vmem:[%s1276_s2 + $0x28] sm:$0xff] }
   0x8   :  { %798 = vmatprep.subr.mxu0 %v14_v4  ;;  %827 = vmatprep.subr.mxu1 %v14_v4  ;;  %v46_v17 = vld [vmem:[%s1276_s2 + $0x60] sm:$0xff]  ;;  %v40_v24 = vld [vmem:[%s1276_s2 + $0x30] sm:$0xff]  ;;  %v25_v25 = vld [vmem:[%s1275_s1 + $0x38] sm:$0xff] }
   0x9   :  { %799 = vmatpush3.msra.mxu0 %v14_v4  ;;  %831 = vmatpush3.msra.mxu1 %v14_v4  ;;  %v38_v18 = vld [vmem:[%s1276_s2 + $0x20] sm:$0xff]  ;;  %v33_v26 = vld [vmem:[%s1275_s1 + $0x78] sm:$0xff]  ;;  %v47_v28 = vld [vmem:[%s1276_s2 + $0x68] sm:$0xff] }
   0xa   :  { %800 = vmatprep.mubr.msk.f32.mxu0 %vm130_vm0, %v18_v5  ;;  %812 = vmatprep.mubr.msk.f32.mxu1 %vm130_vm0, %v26_v6  ;;  %v41_v27 = vld [vmem:[%s1276_s2 + $0x38] sm:$0xff]  ;;  %v36_v29 = vld [vmem:[%s1276_s2 + $0x10] sm:$0xff]  ;;  %v42_v33 = vld [vmem:[%s1276_s2 + $0x40] sm:$0xff] }
   0xb   :  { %801 = vmatmul.mubr.msk.f32.vlgmr.msra.gmra.mxu0 %vm130_vm0, %v19_v7  ;;  %813 = vmatmul.mubr.msk.f32.vlgmr.msra.gmra.mxu1 %vm130_vm0, %v27_v8  ;;  %v48_v30 = vld [vmem:[%s1276_s2 + $0x70] sm:$0xff]  ;;  %v37_v31 = vld [vmem:[%s1276_s2 + $0x18] sm:$0xff]  ;;  %v43_v34 = vld [vmem:[%s1276_s2 + $0x48] sm:$0xff] }
   0xc   :  { %803 = vmatprep.mubr.msk.f32.mxu0 %vm130_vm0, %v20_v9  ;;  %815 = vmatprep.mubr.msk.f32.mxu1 %vm130_vm0, %v28_v10  ;;  %v49_v32 = vld [vmem:[%s1276_s2 + $0x78] sm:$0xff]  ;;  %v44_v35 = vld [vmem:[%s1276_s2 + $0x50] sm:$0xff] }
   0xd   :  { %52 = vperm.xlu0 %834, %v34_v11   ;;  %57 = vperm.xlu1 %835, %v35_v12   ;;  %v45_v36 = vld [vmem:[%s1276_s2 + $0x58] sm:$0xff] }
   0xf   :  { %804 = vmatmul.mubr.msk.f32.gmra.mxu0 %vm130_vm0, %v21_v13  ;;  %816 = vmatmul.mubr.msk.f32.gmra.mxu1 %vm130_vm0, %v29_v14 }
  0x10   :  { %806 = vmatprep.mubr.msk.f32.mxu0 %vm130_vm0, %v22_v15  ;;  %818 = vmatprep.mubr.msk.f32.mxu1 %vm130_vm0, %v30_v16 }
  0x11   :  { %112 = vperm.xlu0 %834, %v46_v17   ;;  %72 = vperm.xlu1 %835, %v38_v18  }
  0x13   :  { %807 = vmatmul.mubr.msk.f32.gmra.mxu0 %vm130_vm0, %v23_v19  ;;  %819 = vmatmul.mubr.msk.f32.gmra.mxu1 %vm130_vm0, %v31_v20 }
  0x14   :  { %809 = vmatprep.mubr.msk.f32.mxu0 %vm130_vm0, %v24_v21  ;;  %821 = vmatprep.mubr.msk.f32.mxu1 %vm130_vm0, %v32_v22 }
  0x15   :  { %77 = vperm.xlu0 %834, %v39_v23   ;;  %82 = vperm.xlu1 %835, %v40_v24  }
  0x17   :  { %810 = vmatmul.mubr.msk.f32.gmra.mxu0 %vm130_vm0, %v25_v25  ;;  %822 = vmatmul.mubr.msk.f32.gmra.mxu1 %vm130_vm0, %v33_v26 }
  0x19   :  { %87 = vperm.xlu0 %834, %v41_v27   ;;  %117 = vperm.xlu1 %835, %v47_v28  }
  0x1d   :  { %62 = vperm.xlu0 %834, %v36_v29   ;;  %122 = vperm.xlu1 %835, %v48_v30  }
  0x21   :  { %67 = vperm.xlu0 %834, %v37_v31   ;;  %127 = vperm.xlu1 %835, %v49_v32  }
  0x25   :  { %92 = vperm.xlu0 %834, %v42_v33   ;;  %97 = vperm.xlu1 %835, %v43_v34  }
  0x29   :  { %102 = vperm.xlu0 %834, %v44_v35   ;;  %107 = vperm.xlu1 %835, %v45_v36  }
  0x88   :  { %v53_v37 = vpop.permute.xlu0 %52  ;;  %v58_v38 = vpop.permute.xlu1 %57 }
  0x8c   :  { %v113_v39 = vpop.permute.xlu0 %112  ;;  %v73_v40 = vpop.permute.xlu1 %72 }
  0x90   :  { %v78_v41 = vpop.permute.xlu0 %77  ;;  %v1021_v42 = vpop.permute.xlu1 %82 }
  0x94   :  { %v88_v45 = vpop.permute.xlu0 %87  ;;  %v118_v46 = vpop.permute.xlu1 %117 }
  0x98   :  { %v1033_v53 = vpop.permute.xlu0 %62  ;;  %v1035_v54 = vpop.permute.xlu1 %122 }
  0x9c   :  { %v68_v4 = vpop.permute.xlu0 %67  ;;  %v128_v5 = vpop.permute.xlu1 %127 }
  0xcb   :  { %v802_v43 = vpop.f32.mrf.mxu0  ;;  %v1023_v44 = vpop.f32.mrf.mxu1 }
  0xcc   :  { %v251_v57 = vadd.f32 %v802_v43, %v58_v38 }
  0xcd   :  { %v245_v47 = vpop.f32.mrf.mxu0  ;;  %v1025_v48 = vpop.f32.mrf.mxu1 }
  0xce   :  { %v246_v59 = vadd.f32 %v245_v47, %v53_v37 }
  0xcf   :  { %v805_v49 = vpop.f32.mrf.mxu0  ;;  %v1027_v50 = vpop.f32.mrf.mxu1 }
  0xd0   :  { %v261_v10 = vadd.f32 %v805_v49, %v68_v4 }
  0xd1   :  { %v1029_v51 = vpop.f32.mrf.mxu0  ;;  %v1031_v52 = vpop.f32.mrf.mxu1 }
  0xd3   :  { %v808_v55 = vpop.f32.mrf.mxu0  ;;  %v820_v56 = vpop.f32.mrf.mxu1 }
  0xd4   :  { %v311_v58 = vadd.f32 %v820_v56, %v118_v46  ;;  %v1037_v62 = vadd.f32 %v808_v55, %v78_v41 }
  0xd5   :  { %v265_v60 = vpop.f32.mrf.mxu0  ;;  %v305_v61 = vpop.f32.mrf.mxu1 }
  0xd6   :  { %v1039_v63 = vmul.f32 %v311_v58, %v251_v57  ;;  %v1041_v0 = vadd.f32 %v265_v60, %v73_v40  ;;  %v306_v1 = vadd.f32 %v305_v61, %v113_v39 }
  0xd7   :  { %v811_v2 = vpop.f32.mrf.mxu0  ;;  %v823_v3 = vpop.f32.mrf.mxu1 }
  0xd8   :  { %v426_v6 = vmul.f32 %v1039_v63, %v1037_v62  ;;  %v425_v7 = vmul.f32 %v1039_v63, %v1041_v0  ;;  %v324_v8 = vmul.f32 %v306_v1, %v246_v59  ;;  %v1047_v9 = vadd.f32 %v811_v2, %v88_v45 }
  0xd9   :  { %v321_v11 = vadd.f32 %v823_v3, %v128_v5  ;;  %v275_v45 = vpop.f32.mrf.mxu0 }
  0xda   :  { %v435_v12 = vrot.slane %v426_v6, 4  ;;  %v429_v13 = vrot.slane %v425_v7, 4  ;;  %v328_v14 = vmul.f32 %v324_v8, %v1041_v0  ;;  %v329_v15 = vmul.f32 %v324_v8, %v1037_v62 }
  0xdb   :  { %v331_v16 = vmul.f32 %v324_v8, %v1047_v9  ;;  %v428_v17 = vmul.f32 %v1039_v63, %v1047_v9  ;;  %v327_v18 = vmul.f32 %v321_v11, %v261_v10  ;;  %v276_v1 = vadd.f32 %v275_v45, %v1021_v42 }
  0xdc   :  { %v436_v19 = vadd.f32 %v435_v12, %v426_v6  ;;  %v430_v20 = vadd.f32 %v429_v13, %v425_v7  ;;  %v332_v21 = vrot.slane %v328_v14, 4  ;;  %v338_v22 = vrot.slane %v329_v15, 4  ;;  %v315_v7 = vpop.f32.mrf.mxu1 }
  0xdd   :  { %v350_v23 = vrot.slane %v331_v16, 4  ;;  %v447_v24 = vrot.slane %v428_v17, 4  ;;  %v611_v25 = vmul.f32 %v327_v18, %v1041_v0  ;;  %v612_v26 = vmul.f32 %v327_v18, %v1037_v62 }
  0xde   :  { %v437_v27 = vrot.slane %v436_v19, 2  ;;  %v431_v28 = vrot.slane %v430_v20, 2  ;;  %v333_v29 = vadd.f32 %v332_v21, %v328_v14  ;;  %v339_v30 = vadd.f32 %v338_v22, %v329_v15 }
  0xdf   :  { %v351_v31 = vadd.f32 %v350_v23, %v331_v16  ;;  %v448_v32 = vadd.f32 %v447_v24, %v428_v17  ;;  %v614_v33 = vmul.f32 %v327_v18, %v1047_v9  ;;  %v615_v34 = vrot.slane %v611_v25, 4 }
  0xe0   :  { %v438_v35 = vadd.f32 %v437_v27, %v436_v19  ;;  %v432_v36 = vadd.f32 %v431_v28, %v430_v20  ;;  %v334_v37 = vrot.slane %v333_v29, 2  ;;  %v340_v38 = vrot.slane %v339_v30, 2 }
  0xe1   :  { %v352_v39 = vrot.slane %v351_v31, 2  ;;  %v449_v40 = vrot.slane %v448_v32, 2  ;;  %v616_v41 = vadd.f32 %v615_v34, %v611_v25  ;;  %v621_v43 = vrot.slane %v612_v26, 4 }
  0xe2   :  { %v439_v46 = vrot.slane %v438_v35, 1  ;;  %v433_v47 = vrot.slane %v432_v36, 1  ;;  %v335_v49 = vadd.f32 %v334_v37, %v333_v29  ;;  %v341_v55 = vadd.f32 %v340_v38, %v339_v30 }
  0xe3   :  { %v353_v56 = vadd.f32 %v352_v39, %v351_v31  ;;  %v450_v57 = vadd.f32 %v449_v40, %v448_v32  ;;  %v617_v58 = vrot.slane %v616_v41, 2  ;;  %v622_v59 = vadd.f32 %v621_v43, %v612_v26 }
  0xe4   :  { %v1057_v60 = vadd.f32 %v439_v46, %v438_v35  ;;  %v1059_v61 = vadd.f32 %v433_v47, %v432_v36  ;;  %v336_v2 = vrot.slane %v335_v49, 1  ;;  %v342_v5 = vrot.slane %v341_v55, 1 }
  0xe5   :  { %v618_v3 = vadd.f32 %v617_v58, %v616_v41  ;;  %v623_v4 = vrot.slane %v622_v59, 2  ;;  %v633_v6 = vrot.slane %v614_v33, 4  ;;  %v256_v10 = vadd.f32 %v1029_v51, %v1033_v53 }
  0xe6   :  { %v453_v11 = vmax.f32 %v1059_v61, %v1057_v60  ;;  %v354_v12 = vrot.slane %v353_v56, 1  ;;  %v451_v13 = vrot.slane %v450_v57, 1  ;;  %v330_v16 = vmul.f32 %v324_v8, %v276_v1 }
  0xe7   :  { %v624_v14 = vadd.f32 %v623_v4, %v622_v59  ;;  %v634_v15 = vadd.f32 %v633_v6, %v614_v33  ;;  %v427_v17 = vmul.f32 %v1039_v63, %v276_v1  ;;  %v1067_v42 = vadd.f32 %v336_v2, %v335_v49 }
  0xe8   :  { %v619_v19 = vrot.slane %v618_v3, 1  ;;  %v613_v20 = vmul.f32 %v327_v18, %v276_v1  ;;  %v316_v21 = vadd.f32 %v315_v7, %v1035_v54  ;;  %v1070_v22 = vadd.f32 %v342_v5, %v341_v55 }
  0xe9   :  { %v635_v23 = vrot.slane %v634_v15, 2  ;;  %v344_v51 = vrot.slane %v330_v16, 4  ;;  %v441_v53 = vrot.slane %v427_v17, 4  ;;  %v1072_v24 = vadd.f32 %v354_v12, %v353_v56 }
  0xea   :  { %v1074_v25 = vadd.f32 %v451_v13, %v450_v57  ;;  %v627_v26 = vrot.slane %v613_v20, 4  ;;  %v326_v27 = vmul.f32 %v316_v21, %v256_v10  ;;  %v625_v8 = vrot.slane %v624_v14, 1 }
  0xeb   :  { %v636_v28 = vadd.f32 %v635_v23, %v634_v15  ;;  %v345_v63 = vadd.f32 %v344_v51, %v330_v16  ;;  %v442_v29 = vadd.f32 %v441_v53, %v427_v17  ;;  %v1076_v30 = vadd.f32 %v619_v19, %v618_v3 }
  0xec   :  { %v628_v18 = vadd.f32 %v627_v26, %v613_v20  ;;  %v518_v54 = vmul.f32 %v326_v27, %v1041_v0  ;;  %v519_v31 = vmul.f32 %v326_v27, %v1037_v62  ;;  %v520_v35 = vmul.f32 %v326_v27, %v276_v1 }
  0xed   :  { %v637_v32 = vrot.slane %v636_v28, 1  ;;  %v346_v33 = vrot.slane %v345_v63, 2  ;;  %v443_v34 = vrot.slane %v442_v29, 2  ;;  %v521_v37 = vmul.f32 %v326_v27, %v1047_v9 }
  0xee   :  { %v629_v36 = vrot.slane %v628_v18, 2  ;;  %v522_v38 = vrot.slane %v518_v54, 4  ;;  %v528_v39 = vrot.slane %v519_v31, 4  ;;  %v1081_v40 = vadd.f32 %v625_v8, %v624_v14 }
  0xef   :  { %v347_v41 = vadd.f32 %v346_v33, %v345_v63  ;;  %v444_v43 = vadd.f32 %v443_v34, %v442_v29  ;;  %v534_v45 = vrot.slane %v520_v35, 4  ;;  %v540_v0 = vrot.slane %v521_v37, 4 }
  0xf0   :  { %v630_v46 = vadd.f32 %v629_v36, %v628_v18  ;;  %v523_v47 = vadd.f32 %v522_v38, %v518_v54  ;;  %v529_v49 = vadd.f32 %v528_v39, %v519_v31  ;;  %v1083_v55 = vadd.f32 %v637_v32, %v636_v28 }
  0xf1   :  { %v348_v62 = vrot.slane %v347_v41, 1  ;;  %v445_v56 = vrot.slane %v444_v43, 1  ;;  %v535_v57 = vadd.f32 %v534_v45, %v520_v35  ;;  %v541_v9 = vadd.f32 %v540_v0, %v521_v37 }
  0xf2   :  { %v631_v58 = vrot.slane %v630_v46, 1  ;;  %v524_v59 = vrot.slane %v523_v47, 2  ;;  %v530_v1 = vrot.slane %v529_v49, 2  ;;  %v639_v2 = vmax.f32 %v1076_v30, %v1081_v40 }
  0xf3   :  { %v349_v3 = vadd.f32 %v348_v62, %v347_v41  ;;  %v446_v4 = vadd.f32 %v445_v56, %v444_v43  ;;  %v536_v5 = vrot.slane %v535_v57, 2  ;;  %v542_v12 = vrot.slane %v541_v9, 2 }
  0xf4   :  { %v632_v6 = vadd.f32 %v631_v58, %v630_v46  ;;  %v525_v7 = vadd.f32 %v524_v59, %v523_v47  ;;  %v531_v10 = vadd.f32 %v530_v1, %v529_v49  ;;  %v356_v13 = vmax.f32 %v1067_v42, %v1070_v22 }
  0xf5   :  { %v357_v14 = vmax.f32 %v349_v3, %v1072_v24  ;;  %v454_v15 = vmax.f32 %v446_v4, %v1074_v25  ;;  %v537_v16 = vadd.f32 %v536_v5, %v535_v57  ;;  %v543_v21 = vadd.f32 %v542_v12, %v541_v9 }
  0xf6   :  { %v640_v17 = vmax.f32 %v632_v6, %v1083_v55  ;;  %v526_v19 = vrot.slane %v525_v7, 1  ;;  %v532_v20 = vrot.slane %v531_v10, 1 }
  0xf7   :  { %v358_v23 = vmax.f32 %v356_v13, %v357_v14  ;;  %v455_v51 = vmax.f32 %v453_v11, %v454_v15  ;;  %v538_v27 = vrot.slane %v537_v16, 1  ;;  %v544_v32 = vrot.slane %v543_v21, 1 }
  0xf8   :  { %v641_v53 = vmax.f32 %v639_v2, %v640_v17  ;;  %v527_v26 = vadd.f32 %v526_v19, %v525_v7  ;;  %v533_v31 = vadd.f32 %v532_v20, %v531_v10 }
  0xf9   :  { %v359_v8 = vsub.f32 %v1067_v42, %v358_v23  ;;  %v360_v28 = vsub.f32 %v1070_v22, %v358_v23  ;;  %v361_v63 = vsub.f32 %v349_v3, %v358_v23  ;;  %v456_v29 = vsub.f32 %v1059_v61, %v455_v51 }
  0xfa   :  { %v457_v18 = vsub.f32 %v1057_v60, %v455_v51  ;;  %v458_v54 = vsub.f32 %v446_v4, %v455_v51  ;;  %v642_v11 = vsub.f32 %v1076_v30, %v641_v53  ;;  %v643_v37 = vsub.f32 %v1081_v40, %v641_v53 }
  0xfb   :  { %v363_v33 = vmul.f32 1.442695, %v359_v8  ;;  %v365_v34 = vmul.f32 1.442695, %v360_v28  ;;  %v367_v35 = vmul.f32 1.442695, %v361_v63  ;;  %v644_v38 = vsub.f32 %v632_v6, %v641_v53 }
  0xfc   :  { %v460_v36 = vmul.f32 1.442695, %v456_v29  ;;  %v462_v42 = vmul.f32 1.442695, %v457_v18  ;;  %v459_v22 = vsub.f32 %v1074_v25, %v455_v51  ;;  %v464_v61 = vmul.f32 1.442695, %v458_v54 }
  0xfd   :  { %836 = vpow2.f32 %v363_v33  ;;  %v539_v39 = vadd.f32 %v538_v27, %v537_v16  ;;  %v646_v60 = vmul.f32 1.442695, %v642_v11  ;;  %v545_v41 = vadd.f32 %v544_v32, %v543_v21 }
  0xfe   :  { %838 = vpow2.f32 %v365_v34  ;;  %v546_v43 = vmax.f32 %v527_v26, %v533_v31  ;;  %v645_v45 = vsub.f32 %v1083_v55, %v641_v53  ;;  %v648_v46 = vmul.f32 1.442695, %v643_v37 }
  0xff   :  { %840 = vpow2.f32 %v367_v35  ;;  %v362_v30 = vsub.f32 %v1072_v24, %v358_v23  ;;  %v650_v40 = vmul.f32 1.442695, %v644_v38  ;;  %v547_v47 = vmax.f32 %v539_v39, %v545_v41 }
 0x100   :  { %842 = vpow2.f32 %v460_v36  ;;  %v466_v0 = vmul.f32 1.442695, %v459_v22  ;;  %v652_v62 = vmul.f32 1.442695, %v645_v45  ;;  %v393_v34 = vlaneseq }
 0x101   :  { %844 = vpow2.f32 %v462_v42  ;;  %v369_v49 = vmul.f32 1.442695, %v362_v30  ;;  %v548_v25 = vmax.f32 %v546_v43, %v547_v47 }
 0x102   :  { %846 = vpow2.f32 %v464_v61 }
 0x103   :  { %848 = vpow2.f32 %v646_v60  ;;  %v549_v56 = vsub.f32 %v527_v26, %v548_v25  ;;  %v550_v57 = vsub.f32 %v533_v31, %v548_v25  ;;  %v551_v58 = vsub.f32 %v539_v39, %v548_v25 }
 0x104   :  { %850 = vpow2.f32 %v648_v46  ;;  %v552_v59 = vsub.f32 %v545_v41, %v548_v25 }
 0x105   :  { %852 = vpow2.f32 %v650_v40  ;;  %v553_v55 = vmul.f32 1.442695, %v549_v56  ;;  %v555_v1 = vmul.f32 1.442695, %v550_v57  ;;  %v557_v9 = vmul.f32 1.442695, %v551_v58 }
 0x106   :  { %854 = vpow2.f32 %v369_v49  ;;  %v559_v24 = vmul.f32 1.442695, %v552_v59  ;;  %v394_v49 = vshrl.u32 %v393_v34, 7  ;;  %v98_v34 = vpop.permute.xlu1 %97 }
 0x107   :  { %856 = vpow2.f32 %v466_v0 }
 0x108   :  { %858 = vpow2.f32 %v652_v62 }
 0x109   :  { %860 = vpow2.f32 %v553_v55 }
 0x10a   :  { %v1104_v2 = vpop.eup %836  ;;  %862 = vpow2.f32 %v555_v1 }
 0x10b   :  { %v1106_v3 = vpop.eup %838  ;;  %864 = vpow2.f32 %v557_v9  ;;  %v1168_v9 = vsub.s32 0, %v394_v49 }
 0x10c   :  { %v1108_v4 = vpop.eup %840  ;;  %v375_v5 = vrot.slane %v1106_v3, 7  ;;  %866 = vpow2.f32 %v559_v24 }
 0x10d   :  { %v1111_v6 = vpop.eup %842  ;;  %v378_v12 = vrot.slane %v1108_v4, 6 }
 0x10e   :  { %v1113_v7 = vpop.eup %844  ;;  %v377_v15 = vsel %vm376_vm1, %v375_v5, %v1104_v2 }
 0x10f   :  { %v1115_v10 = vpop.eup %846  ;;  %v472_v13 = vrot.slane %v1113_v7, 7  ;;  %v380_v51 = vsel %vm379_vm2, %v378_v12, %v377_v15 }
 0x110   :  { %v1119_v14 = vpop.eup %848  ;;  %v474_v16 = vrot.slane %v1115_v10, 6 }
 0x111   :  { %v1124_v17 = vpop.eup %850  ;;  %v473_v19 = vsel %vm376_vm1, %v472_v13, %v1111_v6 }
 0x112   :  { %v1128_v20 = vpop.eup %852  ;;  %v658_v21 = vrot.slane %v1124_v17, 7  ;;  %v475_v27 = vsel %vm379_vm2, %v474_v16, %v473_v19 }
 0x113   :  { %v1131_v23 = vpop.eup %854  ;;  %v660_v53 = vrot.slane %v1128_v20, 6 }
 0x114   :  { %v1135_v26 = vpop.eup %856  ;;  %v659_v8 = vsel %vm376_vm1, %v658_v21, %v1119_v14  ;;  %v381_v28 = vrot.slane %v1131_v23, 5 }
 0x115   :  { %v1141_v63 = vpop.eup %858  ;;  %v661_v29 = vsel %vm379_vm2, %v660_v53, %v659_v8  ;;  %v476_v18 = vrot.slane %v1135_v26, 5 }
 0x116   :  { %v1145_v54 = vpop.eup %860  ;;  %v383_v31 = vsel %vm382_vm3, %v381_v28, %v380_v51  ;;  %v662_v32 = vrot.slane %v1141_v63, 5 }
 0x117   :  { %v1149_v33 = vpop.eup %862  ;;  %v386_v35 = vsel %vm385_vm4, %v383_v31, 0.0  ;;  %v477_v11 = vsel %vm382_vm3, %v476_v18, %v475_v27 }
 0x118   :  { %v1153_v36 = vpop.eup %864  ;;  %v565_v37 = vrot.slane %v1149_v33, 7  ;;  %v387_v42 = vrot.slane %v386_v35, 4  ;;  %v479_v38 = vsel %vm385_vm4, %v477_v11, 0.0  ;;  %v663_v22 = vsel %vm382_vm3, %v662_v32, %v661_v29  ;;  %v93_v32 = vpop.permute.xlu0 %92 }
 0x119   :  { %v1158_v61 = vpop.eup %866  ;;  %v567_v39 = vrot.slane %v1153_v36, 6  ;;  %v480_v60 = vrot.slane %v479_v38, 4  ;;  %v665_v41 = vsel %vm385_vm4, %v663_v22, 0.0 }
 0x11a   :  { %v566_v43 = vsel %vm376_vm1, %v565_v37, %v1145_v54  ;;  %v569_v45 = vrot.slane %v1158_v61, 5  ;;  %v388_v46 = vadd.f32 %v387_v42, %v386_v35  ;;  %v666_v30 = vrot.slane %v665_v41, 4 }
 0x11b   :  { %v568_v40 = vsel %vm379_vm2, %v567_v39, %v566_v43  ;;  %v481_v47 = vadd.f32 %v480_v60, %v479_v38  ;;  %v291_v37 = vadd.f32 %v1023_v44, %v98_v34  ;;  %v286_v42 = vadd.f32 %v1025_v48, %v93_v32  ;;  %v108_v39 = vpop.permute.xlu1 %107 }
 0x11c   :  { %v570_v0 = vsel %vm382_vm3, %v569_v45, %v568_v40  ;;  %v389_v25 = vrot.slane %v388_v46, 2  ;;  %v667_v62 = vadd.f32 %v666_v30, %v665_v41  ;;  %v103_v35 = vpop.permute.xlu0 %102 }
 0x11d   :  { %v572_v56 = vsel %vm385_vm4, %v570_v0, 0.0  ;;  %v482_v57 = vrot.slane %v481_v47, 2  ;;  %v296_v38 = vadd.f32 %v1031_v52, %v103_v35 }
 0x11e   :  { %v573_v58 = vrot.slane %v572_v56, 4  ;;  %v390_v59 = vadd.f32 %v389_v25, %v388_v46  ;;  %v668_v55 = vrot.slane %v667_v62, 2 }
 0x11f   :  { %v483_v1 = vadd.f32 %v482_v57, %v481_v47 }
 0x120   :  { %v574_v24 = vadd.f32 %v573_v58, %v572_v56  ;;  %v391_v5 = vrot.slane %v390_v59, 1  ;;  %v669_v12 = vadd.f32 %v668_v55, %v667_v62 }
 0x121   :  { %v484_v13 = vrot.slane %v483_v1, 1 }
 0x122   :  { %v575_v15 = vrot.slane %v574_v24, 2  ;;  %v392_v16 = vadd.f32 %v391_v5, %v390_v59  ;;  %v670_v19 = vrot.slane %v669_v12, 1 }
 0x123   :  { %v485_v21 = vadd.f32 %v484_v13, %v483_v1 }
 0x124   :  { %v576_v51 = vadd.f32 %v575_v15, %v574_v24  ;;  %v396_v53 = vrot.slane %v392_v16, %v1168_v9  ;;  %v671_v27 = vadd.f32 %v670_v19, %v669_v12 }
 0x125   :  { %v489_v8 = vrot.slane %v485_v21, %v1168_v9 }
 0x126   :  { %v577_v28 = vrot.slane %v576_v51, 1  ;;  %868 = vrcp.f32 %v396_v53  ;;  %v675_v29 = vrot.slane %v671_v27, %v1168_v9 }
 0x127   :  { %870 = vrcp.f32 %v489_v8 }
 0x128   :  { %v578_v18 = vadd.f32 %v577_v28, %v576_v51  ;;  %872 = vrcp.f32 %v675_v29 }
 0x12a   :  { %v582_v31 = vrot.slane %v578_v18, %v1168_v9 }
 0x12c   :  { %874 = vrcp.f32 %v582_v31 }
 0x133   :  { %v869_v11 = vpop.eup %868 }
 0x134   :  { %v871_v22 = vpop.eup %870  ;;  %v398_v60 = vmul.f32 %v869_v11, %v1104_v2  ;;  %v399_v41 = vmul.f32 %v869_v11, %v1106_v3  ;;  %v400_v43 = vmul.f32 %v869_v11, %v1108_v4  ;;  %v401_v45 = vmul.f32 %v869_v11, %v1131_v23 }
 0x135   :  { %v491_v46 = vmul.f32 %v871_v22, %v1111_v6  ;;  %v492_v30 = vmul.f32 %v871_v22, %v1113_v7  ;;  %v493_v44 = vmul.f32 %v871_v22, %v1115_v10  ;;  %v494_v48 = vmul.f32 %v871_v22, %v1135_v26  ;;  %v873_v47 = vpop.eup %872 }
 0x136   :  { %v405_v52 = vrot.slane %v398_v60, %v1168_v9  ;;  %v409_v40 = vrot.slane %v399_v41, %v1168_v9  ;;  %v413_v2 = vrot.slane %v400_v43, %v1168_v9  ;;  %v417_v3 = vrot.slane %v401_v45, %v1168_v9 }
 0x137   :  { %v301_v4 = vadd.f32 %v1027_v50, %v108_v39  ;;  %v498_v23 = vrot.slane %v491_v46, %v1168_v9  ;;  %v502_v6 = vrot.slane %v492_v30, %v1168_v9  ;;  %v506_v7 = vrot.slane %v493_v44, %v1168_v9 }
 0x138   :  { %v418_v10 = vmul.f32 %v405_v52, %v286_v42  ;;  %v419_v49 = vmul.f32 %v409_v40, %v291_v37  ;;  %v420_v26 = vmul.f32 %v413_v2, %v296_v38  ;;  %v510_v0 = vrot.slane %v494_v48, %v1168_v9 }
 0x139   :  { %v875_v25 = vpop.eup %874  ;;  %v421_v62 = vmul.f32 %v417_v3, %v301_v4  ;;  %v511_v56 = vmul.f32 %v498_v23, %v286_v42  ;;  %v512_v57 = vmul.f32 %v502_v6, %v291_v37  ;;  %v513_v58 = vmul.f32 %v506_v7, %v296_v38 }
 0x13a   :  { %v422_v59 = vadd.f32 %v419_v49, %v418_v10  ;;  %v584_v50 = vmul.f32 %v875_v25, %v1145_v54  ;;  %v585_v55 = vmul.f32 %v875_v25, %v1149_v33  ;;  %v586_v1 = vmul.f32 %v875_v25, %v1153_v36 }
 0x13b   :  { %v515_v24 = vadd.f32 %v512_v57, %v511_v56  ;;  %v587_v5 = vmul.f32 %v875_v25, %v1158_v61  ;;  %v677_v12 = vmul.f32 %v873_v47, %v1119_v14  ;;  %v678_v13 = vmul.f32 %v873_v47, %v1124_v17 }
 0x13c   :  { %v423_v15 = vadd.f32 %v422_v59, %v420_v26  ;;  %v591_v16 = vrot.slane %v584_v50, %v1168_v9  ;;  %v595_v19 = vrot.slane %v585_v55, %v1168_v9  ;;  %v599_v21 = vrot.slane %v586_v1, %v1168_v9 }
 0x13d   :  { %v514_v51 = vmul.f32 %v510_v0, %v301_v4  ;;  %v516_v54 = vadd.f32 %v515_v24, %v513_v58  ;;  %v679_v33 = vmul.f32 %v873_v47, %v1128_v20  ;;  %v680_v36 = vmul.f32 %v873_v47, %v1141_v63 }
 0x13e   :  { %v424_v53 = vadd.f32 %v423_v15, %v421_v62  ;;  %v603_v61 = vrot.slane %v587_v5, %v1168_v9  ;;  %v604_v27 = vmul.f32 %v591_v16, %v286_v42  ;;  %v605_v14 = vmul.f32 %v595_v19, %v291_v37 }
 0x13f   :  { %v517_v8 = vadd.f32 %v516_v54, %v514_v51  ;;  %v684_v17 = vrot.slane %v677_v12, %v1168_v9  ;;  %v688_v28 = vrot.slane %v678_v13, %v1168_v9  ;;  %v606_v29 = vmul.f32 %v599_v21, %v296_v38 }
 0x140   :  { %704 = vxpose.xlu0.b32.start [1/4] (short) %v424_v53, 128  ;;  %v608_v18 = vadd.f32 %v605_v14, %v604_v27  ;;  %v692_v31 = vrot.slane %v679_v33, %v1168_v9  ;;  %v696_v32 = vrot.slane %v680_v36, %v1168_v9  ;;  %v607_v63 = vmul.f32 %v603_v61, %v301_v4 }
 0x141   :  { %v697_v20 = vmul.f32 %v684_v17, %v286_v42  ;;  %v698_v34 = vmul.f32 %v688_v28, %v291_v37 }
 0x142   :  { %v609_v35 = vadd.f32 %v608_v18, %v606_v29  ;;  %v699_v11 = vmul.f32 %v692_v31, %v296_v38  ;;  %v700_v60 = vmul.f32 %v696_v32, %v301_v4 }
 0x143   :  { %v701_v22 = vadd.f32 %v698_v34, %v697_v20 }
 0x144   :  { %705 = vxpose.xlu0.b32.cont [2/4] (short) %v517_v8, 128  ;;  %v610_v39 = vadd.f32 %v609_v35, %v607_v63 }
 0x145   :  { %v702_v41 = vadd.f32 %v701_v22, %v699_v11 }
 0x147   :  { %v703_v43 = vadd.f32 %v702_v41, %v700_v60 }
 0x148   :  { %706 = vxpose.xlu0.b32.cont [3/4] (short) %v610_v39, 128 }
 0x14c   :  { %707 = vxpose.xlu0.b32.end [4/4] (short) %v703_v43, 128 }
 0x1bc   :  { %v720_v45 = vpop.trf.xlu0 }
 0x1bd   :  { %736 = vst.msk [vmem:[%s1277_s3] sm:$0xff] %vm130_vm0, %v720_v45 }
 0x1c0   :  { %v721_v9 = vpop.trf.xlu0 }
 0x1c1   :  { %737 = vst.msk [vmem:[%s1277_s3 + $0x8] sm:$0xff] %vm130_vm0, %v721_v9 }
 0x1c4   :  { %v722_v37 = vpop.trf.xlu0 }
 0x1c5   :  { %738 = vst.msk [vmem:[%s1277_s3 + $0x10] sm:$0xff] %vm130_vm0, %v722_v37 }
 0x1c8   :  { %v723_v42 = vpop.trf.xlu0 }
 0x1c9   :  { %739 = vst.msk [vmem:[%s1277_s3 + $0x18] sm:$0xff] %vm130_vm0, %v723_v42 }
 0x1cc   :  { %v724_v38 = vpop.trf.xlu0 }
 0x1cd   :  { %740 = vst.msk [vmem:[%s1277_s3 + $0x20] sm:$0xff] %vm130_vm0, %v724_v38 }
 0x1d0   :  { %v725_v46 = vpop.trf.xlu0 }
 0x1d1   :  { %741 = vst.msk [vmem:[%s1277_s3 + $0x28] sm:$0xff] %vm130_vm0, %v725_v46 }
 0x1d4   :  { %v726_v30 = vpop.trf.xlu0 }
 0x1d5   :  { %742 = vst.msk [vmem:[%s1277_s3 + $0x30] sm:$0xff] %vm130_vm0, %v726_v30 }
 0x1d8   :  { %v727_v44 = vpop.trf.xlu0 }
 0x1d9   :  { %743 = vst.msk [vmem:[%s1277_s3 + $0x38] sm:$0xff] %vm130_vm0, %v727_v44 }
 0x1dc   :  { %v728_v48 = vpop.trf.xlu0 }
 0x1dd   :  { %744 = vst.msk [vmem:[%s1277_s3 + $0x40] sm:$0xff] %vm130_vm0, %v728_v48 }
 0x1e0   :  { %v729_v52 = vpop.trf.xlu0 }
 0x1e1   :  { %745 = vst.msk [vmem:[%s1277_s3 + $0x48] sm:$0xff] %vm130_vm0, %v729_v52 }
 0x1e4   :  { %v730_v40 = vpop.trf.xlu0 }
 0x1e5   :  { %746 = vst.msk [vmem:[%s1277_s3 + $0x50] sm:$0xff] %vm130_vm0, %v730_v40 }
 0x1e8   :  { %v731_v2 = vpop.trf.xlu0 }
 0x1e9   :  { %747 = vst.msk [vmem:[%s1277_s3 + $0x58] sm:$0xff] %vm130_vm0, %v731_v2 }
 0x1ec   :  { %v732_v3 = vpop.trf.xlu0 }
 0x1ed   :  { %748 = vst.msk [vmem:[%s1277_s3 + $0x60] sm:$0xff] %vm130_vm0, %v732_v3 }
 0x1f0   :  { %v733_v4 = vpop.trf.xlu0 }
 0x1f1   :  { %749 = vst.msk [vmem:[%s1277_s3 + $0x68] sm:$0xff] %vm130_vm0, %v733_v4 }
 0x1f4   :  { %v734_v23 = vpop.trf.xlu0 }
 0x1f5   :  { %750 = vst.msk [vmem:[%s1277_s3 + $0x70] sm:$0xff] %vm130_vm0, %v734_v23 }
 0x1f8   :  { %v735_v6 = vpop.trf.xlu0 }
 0x1f9   :  { %751 = vst.msk [vmem:[%s1277_s3 + $0x78] sm:$0xff] %vm130_vm0, %v735_v6 }

</bundles_post_ra>
